<compile_context>
chip_gen: v7x
topology: tpu7x:2x2x1
jax: 0.10.0
libtpu: 0.0.40
codegen_flags: <defaults>
</compile_context>

<pallas_src>
import functools
import math

import jax
import jax.numpy as jnp
from jax.experimental import pallas as pl
from jax.experimental.pallas import tpu as pltpu


# ----------------------------------------------------------------------------
# Generic residual add kernel:  out = y + x   (y = fn(x) computed in JAX glue)
# ----------------------------------------------------------------------------
def _add_kernel(y_ref, x_ref, o_ref):
    o_ref[...] = y_ref[...] + x_ref[...]


def pallas_residual_add(y, x, *, tile_bytes=4 * 1024 * 1024):
    """out = y + x, tiled & pipelined over a lane-dense 2-D view of the tensor."""
    assert y.shape == x.shape and y.dtype == x.dtype
    total = math.prod(x.shape) if x.ndim else 1
    itemsize = jnp.dtype(x.dtype).itemsize
    sublane = max(8, 32 // itemsize)          # 8 f32, 16 bf16, 32 int8/fp8

    # Lane width: largest multiple of 128 that divides the flat size (no pad).
    cols = None
    for cand in (4096, 2048, 1024, 512, 256, 128):
        if total % cand == 0:
            cols = cand
            break

    if cols is None:
        # Rare ragged case: pad only the flat tail up to one 128-lane row.
        cols = 128
        rows = pl.cdiv(total, cols)
        pad = rows * cols - total
        y2 = jnp.pad(y.reshape(-1), (0, pad)).reshape(rows, cols)
        x2 = jnp.pad(x.reshape(-1), (0, pad)).reshape(rows, cols)
    else:
        pad = 0
        rows = total // cols
        y2 = y.reshape(rows, cols)
        x2 = x.reshape(rows, cols)

    # Row tile: ~tile_bytes per stream, aligned to the dtype's sublane multiple.
    tr = (tile_bytes // (cols * itemsize)) // sublane * sublane
    tr = max(tr, sublane)
    if tr >= rows:
        tr = rows                              # full-extent block (always legal)

    blk_bytes = tr * cols * itemsize
    # 3 streams (y, x, out) x 2 pipeline buffers + 25% headroom.
    vmem_limit = max(4 * 1024 * 1024, int(blk_bytes * 3 * 2 * 1.25))

    out = pl.pallas_call(
        _add_kernel,
        out_shape=jax.ShapeDtypeStruct((rows, cols), x.dtype),
        grid=(pl.cdiv(rows, tr),),             # ragged last block is masked
        in_specs=[
            pl.BlockSpec((tr, cols), lambda i: (i, 0)),
            pl.BlockSpec((tr, cols), lambda i: (i, 0)),
        ],
        out_specs=pl.BlockSpec((tr, cols), lambda i: (i, 0)),
        # Alias y -> out: y is dead after the add, so no third HBM buffer
        # (XLA inserts a defensive copy if the caller still holds y).
        input_output_aliases={0: 0},
        compiler_params=pltpu.CompilerParams(
            dimension_semantics=("parallel",),
            vmem_limit_bytes=vmem_limit,
        ),
    )(y2, x2)

    if pad:
        out = out.reshape(-1)[:total]
    return out.reshape(x.shape)


class Residual:
    """JAX/Pallas analogue of the PyTorch Residual wrapper.

    fuse_in_jax=True returns fn(x) + x directly so XLA fuses the add into
    fn's epilogue (avoids one full HBM round trip of fn(x)); the default
    demonstrates the standalone Pallas residual-add kernel.  The add runs in
    the input dtype, matching the PyTorch module's semantics.
    """

    def __init__(self, fn, *, fuse_in_jax=False):
        self.fn = fn
        self.fuse_in_jax = fuse_in_jax

    def __call__(self, x, **kwargs):
        y = self.fn(x, **kwargs)          # arbitrary wrapped sub-module (JAX glue)
        if self.fuse_in_jax:
            return y + x                  # XLA fuses into fn's epilogue
        return pallas_residual_add(y, x)  # residual add runs in Pallas


# ----------------------------------------------------------------------------
# Fused demo:  fn = 1x1 conv (channel mix) + bias, fused with the residual add
# in a single Pallas kernel.  NCHW-native; spatial on the lane axis; block-wide
# VPU broadcast-FMAs; large DMA blocks with in-kernel lane chunking.
# ----------------------------------------------------------------------------
def _fused_kernel(x_ref, w_ref, b_ref, o_ref, *, chunk):
    # x_ref / o_ref: (BN, C, THW) VMEM blocks (spatial on lanes).
    # w_ref: (C, C) and b_ref: (C, 1) stay resident in VMEM across all steps.
    bn, c, thw = x_ref.shape
    w = w_ref[...].astype(jnp.float32)
    b = b_ref[...].astype(jnp.float32)                    # (C, 1)
    w_cols = [w[:, ci:ci + 1] for ci in range(c)]         # hoisted (C,1) columns
    n_chunks = thw // chunk

    for i in range(bn):                                   # bn is small & static
        def body(j, carry):
            off = pl.multiple_of(j * chunk, chunk)
            xc = x_ref[i, :, pl.ds(off, chunk)].astype(jnp.float32)   # (C, chunk)
            acc = xc + b                                   # residual + bias (f32)
            for ci in range(c):                            # channel mix on the VPU
                acc = acc + w_cols[ci] * xc[ci:ci + 1, :]  # block-wide FMA
            o_ref[i, :, pl.ds(off, chunk)] = acc.astype(o_ref.dtype)
            return carry
        jax.lax.fori_loop(0, n_chunks, body, 0)


def _largest_mult128_divisor(n, cap):
    """Largest multiple of 128 that divides n and is <= cap (None if none)."""
    best = None
    m = 128
    limit = min(n, cap)
    while m <= limit:
        if n % m == 0:
            best = m
        m += 128
    return best


def residual_conv1x1(x_nchw, w, b, *, block_target_bytes=2 * 1024 * 1024,
                     chunk_lanes=2048):
    """x_nchw: (N, C, H, W);  w: (C_out, C_in);  b: (C_out,).  Returns fn(x)+x (NCHW)."""
    N, C, H, W = x_nchw.shape
    HW = H * W
    # NCHW-native: pure reshape, no transpose (no extra HBM read+write passes).
    x_nc_hw = x_nchw.reshape(N, C, HW)
    b2 = b.reshape(C, 1)
    itemsize = jnp.dtype(x_nchw.dtype).itemsize

    # Spatial tile: largest multiple of 128 dividing HW within the byte budget
    # (lane-dense, unmasked stores); whole spatial extent if HW is ragged.
    if HW % 128 == 0:
        lane_cap = max(128, block_target_bytes // (C * itemsize))
        thw = _largest_mult128_divisor(HW, lane_cap)
    else:
        thw = HW

    # If one batch item's (C, HW) slab is still small, fold several batch
    # indices into one block so the DMA approaches the byte target.
    bn = 1
    if thw == HW:
        per_batch = C * HW * itemsize
        for cand in range(N, 0, -1):
            if N % cand == 0 and cand * per_batch <= block_target_bytes:
                bn = cand
                break

    # In-kernel lane chunk: bounds the live f32 working set (vreg pressure)
    # independently of the (large) DMA block.
    if thw % 128 == 0:
        chunk = _largest_mult128_divisor(thw, chunk_lanes)
    else:
        chunk = thw

    blk_bytes = bn * C * thw * itemsize
    # in + out blocks, double-buffered, + headroom (w/b are negligible).
    # Capped at ~2 MiB blocks -> <=12 MiB, fits v7x's 64 MiB VMEM with room.
    vmem_limit = max(4 * 1024 * 1024, int(blk_bytes * 2 * 2 * 1.5))

    kernel = functools.partial(_fused_kernel, chunk=chunk)
    out = pl.pallas_call(
        kernel,
        out_shape=jax.ShapeDtypeStruct((N, C, HW), x_nchw.dtype),
        grid=(N // bn, HW // thw),
        in_specs=[
            pl.BlockSpec((bn, C, thw), lambda n, h: (n, 0, h)),
            pl.BlockSpec((C, C), lambda n, h: (0, 0)),   # weights stay resident
            pl.BlockSpec((C, 1), lambda n, h: (0, 0)),   # bias stays resident
        ],
        out_specs=pl.BlockSpec((bn, C, thw), lambda n, h: (n, 0, h)),
        compiler_params=pltpu.CompilerParams(
            dimension_semantics=("parallel", "parallel"),
            vmem_limit_bytes=vmem_limit,
        ),
    )(x_nc_hw, w, b2)

    return out.reshape(N, C, H, W)


if __name__ == "__main__":
    key = jax.random.PRNGKey(0)
    kx, kw, kb = jax.random.split(key, 3)

    N, C, H, W = 2, 4, 16, 16
    x = jax.random.normal(kx, (N, C, H, W), dtype=jnp.float32)

    # Deterministic example-fn parameters (1x1 conv channel mixer, out-in layout).
    w = jax.random.normal(kw, (C, C), dtype=jnp.float32) * 0.1
    b = jax.random.normal(kb, (C,), dtype=jnp.float32) * 0.1

    def fn(inp):
        # same 1x1 conv expressed in plain JAX (NCHW), w is (out, in)
        return jnp.einsum("nihw,oi->nohw", inp, w) + b[None, :, None, None]

    ref = fn(x) + x

    # --- Path 1: generic Residual wrapper (fn in JAX, residual add in Pallas) ---
    res = Residual(fn)
    out_generic = jax.block_until_ready(res(x))
    assert jnp.allclose(out_generic, ref, atol=1e-5, rtol=1e-5)

    # --- Path 2: fully fused Pallas kernel (channel mix + bias + residual add) ---
    out_fused = jax.block_until_ready(residual_conv1x1(x, w, b))
    assert jnp.allclose(out_fused, ref, atol=1e-5, rtol=1e-5)

    # --- Extra: exercise the multi-step grid with a ragged (masked) last block
    # of the generic add on a slightly larger tensor (no padding path). ---
    x2 = jax.random.normal(kx, (72, 4, 16, 16), dtype=jnp.float32)
    y2 = jax.random.normal(kw, (72, 4, 16, 16), dtype=jnp.float32)
    expected2 = y2 + x2
    out2 = jax.block_until_ready(pallas_residual_add(y2, x2, tile_bytes=128 * 1024))
    assert jnp.allclose(out2, expected2, atol=1e-6, rtol=1e-6)

    print("KERNEL_OK")
</pallas_src>

<mosaic_0001>
module attributes {stable_mosaic.version = 11 : i64} {
  func.func @_add_kernel(%arg0: i32, %arg1: memref<1x2048xf32, #tpu.memory_space<vmem>>, %arg2: memref<1x2048xf32, #tpu.memory_space<vmem>>, %arg3: memref<1x2048xf32, #tpu.memory_space<vmem>>) attributes {dimension_semantics = [#tpu.dimension_semantics<parallel>], iteration_bounds = array<i64: 1>, scalar_prefetch = 0 : i64, scratch_operands = 0 : i64, tpu.core_type = #tpu.core_type<tc>, window_params = [{transform_indices = @transform_0, window_bounds = array<i64: 1, 2048>}, {transform_indices = @transform_1, window_bounds = array<i64: 1, 2048>}, {transform_indices = @transform_2, window_bounds = array<i64: 1, 2048>}]} {
    %c0 = arith.constant 0 : index
    %c0_0 = arith.constant 0 : index
    %0 = vector.load %arg1[%c0, %c0_0] : memref<1x2048xf32, #tpu.memory_space<vmem>>, vector<1x2048xf32>
    %c0_1 = arith.constant 0 : index
    %c0_2 = arith.constant 0 : index
    %1 = vector.load %arg2[%c0_1, %c0_2] : memref<1x2048xf32, #tpu.memory_space<vmem>>, vector<1x2048xf32>
    %2 = arith.addf %0, %1 : vector<1x2048xf32>
    %c0_3 = arith.constant 0 : index
    %c0_4 = arith.constant 0 : index
    %3 = vector.load %arg3[%c0_3, %c0_4] : memref<1x2048xf32, #tpu.memory_space<vmem>>, vector<1x2048xf32>
    tpu.vector_store %arg3[%c0_3, %c0_4], %2 {strides = array<i32>} : memref<1x2048xf32, #tpu.memory_space<vmem>>, vector<1x2048xf32>,
    return
  }
  func.func @transform_0(%arg0: i32) -> (i32, i32) {
    %c0_i32 = arith.constant 0 : i32
    %c0_i32_0 = arith.constant 0 : i32
    return %arg0, %c0_i32 : i32, i32
  }
  func.func @transform_1(%arg0: i32) -> (i32, i32) {
    %c0_i32 = arith.constant 0 : i32
    %c0_i32_0 = arith.constant 0 : i32
    return %arg0, %c0_i32 : i32, i32
  }
  func.func @transform_2(%arg0: i32) -> (i32, i32) {
    %c0_i32 = arith.constant 0 : i32
    %c0_i32_0 = arith.constant 0 : i32
    return %arg0, %c0_i32 : i32, i32
  }
}

</mosaic_0001>

<bundles_post_ra>
// kernel: tpu_custom_call.1
= control target key start
LH: loop header
LB: loop body
LE: loop exit
PB: predicated region body
PF: predicated region fallthrough
CT: control target
= control target key end

     0   :  { %7 = vsyncpa [#allocation3], 0  ;;  %s144_s0 = inlined_call_operand.hbm [shape: f32[1,2048], index: 0, kind: input, shape index: {}, may-alias: {0,2}]   ;;  %s145_s1 = inlined_call_operand.vmem [shape: f32[1,2048], index: 1, kind: input, shape index: {}]   ;;  %s146_s2 = inlined_call_operand.hbm [shape: f32[1,2048], index: 2, kind: output, shape index: {}, may-alias: {0,2}]  }
   0x1   :  { %8 = vsyncpa [#allocation4], 0  ;;  %s97_s9 = smov [#allocation2]   ;;  %s49_s13 = scalar_lea.hbm %s144_s0, 256 }
   0x2   :  { %s15_s10 = sshll.u32 %s97_s9, 4  ;;  %p50_p0 = scmp.ne.s32.totalorder %s144_s0, %s49_s13  ;;  %s16_s10 = int_to_ptr.vmem [resolvable:$true] %s15_s10 }
   0x3   :  { %p53_p1 = scmp.lt.u32.totalorder %s49_s13, %s144_s0 }
   0x5   :  { %p55_p2 = pnand %p53_p1, %p50_p0 }
   0x7   :  { %58 = shalt.err (!%p55_p2)
}
   0x8   :  { %s59_s18 = scalar_lea.vmem %s16_s10, 256  ;;  %p64_p4 = scmp.lt.s32.totalorder %s16_s10, %s16_s10 }
   0x9   :  { %p60_p3 = scmp.ne.s32.totalorder %s16_s10, %s59_s18  ;;  %p65_p5 = scmp.lt.s32.totalorder %s59_s18, %s59_s18 }
   0xb   :  { %p66_p6 = por %p65_p5, %p64_p4 }
   0xd   :  { %p67_p7 = pnand %p66_p6, %p60_p3 }
   0xf   :  { %70 = shalt.err (!%p67_p7)
}
  0x10   :  { %18 = dma.hbm_to_vmem [thread:$0]  %s144_s0, 256, %s16_s10, [#allocation3]  }
  0x11   :  { %93 = dma.done.wait [#allocation3], 256  }
  0x12   :  { %94 = vsyncadd [#allocation3], 4294967040  ;;  %s98_s21 = smov [#allocation5]   ;;  %v24_v0 = vld [vmem:[#allocation2] sm:$0xff]  ;;  %v25_v2 = vld [vmem:[#allocation2 + $0x8] sm:$0xff] }
  0x13   :  { %s38_s22 = sshll.u32 %s98_s21, 4  ;;  %v26_v1 = vld [vmem:[%s145_s1] sm:$0xff]  ;;  %v27_v4 = vld [vmem:[%s145_s1 + $0x8] sm:$0xff]  ;;  %s39_s22 = int_to_ptr.vmem [resolvable:$true] %s38_s22 }
  0x14   :  { %v28_v3 = vadd.f32 %v26_v1, %v24_v0  ;;  %v29_v5 = vadd.f32 %v27_v4, %v25_v2  ;;  %s71_s0 = scalar_lea.vmem %s39_s22, 256  ;;  %p76_p9 = scmp.lt.s32.totalorder %s39_s22, %s39_s22 }
  0x15   :  { %p72_p8 = scmp.ne.s32.totalorder %s39_s22, %s71_s0  ;;  %p77_p10 = scmp.lt.s32.totalorder %s71_s0, %s71_s0 }
  0x16   :  { %30 = vst [vmem:[#allocation5] sm:$0xff] %v28_v3  ;;  %31 = vst [vmem:[#allocation5 + $0x8] sm:$0xff] %v29_v5 }
  0x17   :  { %p78_p11 = por %p77_p10, %p76_p9 }
  0x19   :  { %p79_p12 = pnand %p78_p11, %p72_p8 }
  0x1b   :  { %82 = shalt.err (!%p79_p12)
}
  0x1c   :  { %s83_s29 = scalar_lea.hbm %s146_s2, 256 }
  0x1d   :  { %p84_p13 = scmp.ne.s32.totalorder %s146_s2, %s83_s29  ;;  %p87_p0 = scmp.lt.u32.totalorder %s83_s29, %s146_s2 }
  0x1f   :  { %p89_p1 = pnand %p87_p0, %p84_p13 }
  0x21   :  { %92 = shalt.err (!%p89_p1)
}
  0x22   :  { %41 = dma.vmem_to_hbm [thread:$0]  %s39_s22, 256, %s146_s2, [#allocation4]  }
  0x23   :  { %95 = dma.done.wait [#allocation4], 256  }
  0x24   :  { %96 = vsyncadd [#allocation4], 4294967040 }
  0x25   :  { %45 = vsyncpa [#allocation3], 1 }
  0x26   :  { %46 = vsyncpa [#allocation4], 1 }

</bundles_post_ra>
